<compile_context>
chip_gen: v7x
topology: tpu7x:2x2x1
jax: 0.10.0
libtpu: 0.0.40
codegen_flags: <defaults>
</compile_context>

<pallas_src>
import functools

import jax
import jax.numpy as jnp
from jax.experimental import pallas as pl
from jax.experimental.pallas import tpu as pltpu

EPS = 1e-5                                   # BatchNorm2d default eps
_TAPS = ((0, 0), (0, 1), (1, 0), (1, 1))     # 2x2 conv taps (dy, dx)


def _conv_image(img_ref, w_ref, h, w, c, compute_dtype):
    """2x2 'same' conv of one padded (h+1, w+1, c) f32 image ref.

    Returns (conv f32 (h*w, c), residual f32 (h*w, c)); the residual is the
    exact original x block (img[1:, 1:, :])."""
    hw = h * w
    conv = jnp.zeros((hw, c), jnp.float32)
    resid = None
    for t, (dy, dx) in enumerate(_TAPS):
        patch = img_ref[dy:dy + h, dx:dx + w, :].reshape(hw, c)  # f32
        conv = conv + jnp.dot(patch.astype(compute_dtype), w_ref[t],
                              preferred_element_type=jnp.float32)
        if (dy, dx) == (1, 1):
            resid = patch                    # exact f32 residual
    return conv, resid


def _stats_kernel(xpad_ref, w_ref, sum_ref, sumsq_ref, *, nb, h, w, c,
                  compute_dtype):
    """Pass 1: this block's partial per-channel sum / sum-of-squares."""
    acc_s = jnp.zeros((1, c), jnp.float32)
    acc_ss = jnp.zeros((1, c), jnp.float32)
    for b in range(nb):                      # static unroll over images
        conv, _ = _conv_image(xpad_ref.at[b], w_ref, h, w, c, compute_dtype)
        acc_s = acc_s + jnp.sum(conv, axis=0, keepdims=True)
        acc_ss = acc_ss + jnp.sum(conv * conv, axis=0, keepdims=True)
    sum_ref[0] = acc_s
    sumsq_ref[0] = acc_ss


def _finalize_kernel(mean_ref, rstd_ref, xpad_ref, w_ref, out_ref, *, nb, h,
                     w, c, compute_dtype):
    """Pass 2: conv -> BN (global batch stats) -> ReLU -> + x."""
    mean = mean_ref[...]                     # (1, c) f32
    rstd = rstd_ref[...]                     # (1, c) f32
    for b in range(nb):
        conv, resid = _conv_image(xpad_ref.at[b], w_ref, h, w, c,
                                  compute_dtype)
        normed = (conv - mean) * rstd
        out_ref[b] = (jnp.maximum(normed, 0.0) + resid).astype(out_ref.dtype)


def resblock_forward(x_nchw, weight, *, compute_dtype=jnp.bfloat16,
                     images_per_step=None, out_dtype=None):
    """x_nchw: (N, C, H, W) float32; weight: (C, C, 2, 2) OIHW float32."""
    n, c, h, w = x_nchw.shape
    cout, cin, kh, kw = weight.shape
    assert cout == c and cin == c and kh == 2 and kw == 2
    out_dtype = x_nchw.dtype if out_dtype is None else out_dtype
    hw = h * w
    m = n * hw                               # BN reduction size

    # One wrapper-side layout op: NCHW -> NHWC + asymmetric "same" spatial
    # padding (1 before, 0 after).  Channels are NOT padded (true-C in HBM).
    x_pad = jnp.pad(jnp.transpose(x_nchw, (0, 2, 3, 1)),
                    ((0, 0), (1, 0), (1, 0), (0, 0)))

    # Per-tap weight matrices, tap-major: (4, c_in, c_out), MXU dtype.
    w_taps = jnp.transpose(weight, (2, 3, 1, 0)).reshape(kh * kw, c, c)
    w_taps = w_taps.astype(compute_dtype)

    # --- images per grid step: biggest block that fits a v7x-safe budget. ---
    x_isz = jnp.dtype(x_pad.dtype).itemsize
    o_isz = jnp.dtype(out_dtype).itemsize
    per_image_bytes = (2 * (h + 1) * (w + 1) * c * x_isz    # dbl-buffered in
                       + 2 * hw * c * o_isz                 # dbl-buffered out
                       + 3 * hw * c * 4)                    # live f32 temps
    budget = 12 * 1024 * 1024
    nb = images_per_step or max(1, budget // max(per_image_bytes, 1))
    nb = max(1, min(nb, n))
    while n % nb:                            # keep blocks exact (no ragged tail)
        nb -= 1
    n_blocks = n // nb
    vmem_limit = int(min(max(32 * 1024 * 1024, 3 * nb * per_image_bytes),
                         56 * 1024 * 1024))  # leave headroom on v7x (64 MiB)

    xpad_spec = pl.BlockSpec((nb, h + 1, w + 1, c), lambda i: (i, 0, 0, 0))
    w_spec = pl.BlockSpec((kh * kw, c, c), lambda i: (0, 0, 0))
    stat_spec = pl.BlockSpec((1, 1, c), lambda i: (i, 0, 0))

    matmul_flops = 2 * hw * c * c * len(_TAPS)
    xpad_bytes = int(x_pad.size) * x_isz
    w_bytes = int(w_taps.size) * jnp.dtype(compute_dtype).itemsize

    # ---- Pass 1: per-block partial channel statistics (fully parallel). ----
    part_sum, part_sumsq = pl.pallas_call(
        functools.partial(_stats_kernel, nb=nb, h=h, w=w, c=c,
                          compute_dtype=compute_dtype),
        grid=(n_blocks,),
        in_specs=[xpad_spec, w_spec],
        out_specs=(stat_spec, stat_spec),
        out_shape=(jax.ShapeDtypeStruct((n_blocks, 1, c), jnp.float32),
                   jax.ShapeDtypeStruct((n_blocks, 1, c), jnp.float32)),
        compiler_params=pltpu.CompilerParams(
            dimension_semantics=("parallel",),
            vmem_limit_bytes=vmem_limit),
        cost_estimate=pl.CostEstimate(
            flops=n * matmul_flops, transcendentals=0,
            bytes_accessed=xpad_bytes + w_bytes + 2 * n_blocks * c * 4),
    )(x_pad, w_taps)

    # Tiny (n_blocks, C) reduction + BN finalisation in the host graph.
    total_sum = jnp.sum(part_sum, axis=(0, 1))
    total_sumsq = jnp.sum(part_sumsq, axis=(0, 1))
    mean = total_sum / m
    var = jnp.maximum(total_sumsq / m - mean * mean, 0.0)   # guard cancellation
    rstd = jax.lax.rsqrt(var + EPS)
    mean2d = mean.reshape(1, c).astype(jnp.float32)
    rstd2d = rstd.reshape(1, c).astype(jnp.float32)

    # ---- Pass 2: conv -> BN(global stats) -> ReLU -> + x (exact f32 resid). --
    out_flat = pl.pallas_call(
        functools.partial(_finalize_kernel, nb=nb, h=h, w=w, c=c,
                          compute_dtype=compute_dtype),
        grid=(n_blocks,),
        in_specs=[pl.BlockSpec((1, c), lambda i: (0, 0)),
                  pl.BlockSpec((1, c), lambda i: (0, 0)),
                  xpad_spec, w_spec],
        out_specs=pl.BlockSpec((nb, hw, c), lambda i: (i, 0, 0)),
        out_shape=jax.ShapeDtypeStruct((n, hw, c), out_dtype),
        compiler_params=pltpu.CompilerParams(
            dimension_semantics=("parallel",),
            vmem_limit_bytes=vmem_limit),
        cost_estimate=pl.CostEstimate(
            flops=n * (matmul_flops + 6 * hw * c), transcendentals=0,
            bytes_accessed=xpad_bytes + w_bytes + 2 * c * 4
            + n * hw * c * o_isz),
    )(mean2d, rstd2d, x_pad, w_taps)

    # True-C post-op only (NCHW for the PyTorch convention).
    out = out_flat.reshape(n, h, w, c)
    return jnp.transpose(out, (0, 3, 1, 2))


def resblock_reference(x_nchw, weight):
    """Pure-JAX f32 reference (module semantics)."""
    x = x_nchw.astype(jnp.float32)
    conv = jax.lax.conv_general_dilated(
        x, weight.astype(jnp.float32), window_strides=(1, 1),
        padding=((1, 0), (1, 0)),
        dimension_numbers=("NCHW", "OIHW", "NCHW"))
    mean = jnp.mean(conv, axis=(0, 2, 3), keepdims=True)
    var = jnp.mean((conv - mean) ** 2, axis=(0, 2, 3), keepdims=True)
    normed = (conv - mean) * jax.lax.rsqrt(var + EPS)
    return jnp.maximum(normed, 0.0) + x


if __name__ == "__main__":
    # Small shapes consistent with the module: batch=4, channels=16, 16x16, k=2.
    N, C, H, W = 4, 16, 16, 16
    KH = KW = 2

    key = jax.random.PRNGKey(0)
    k_x, k_w = jax.random.split(key)

    x = jax.random.normal(k_x, (N, C, H, W), dtype=jnp.float32)

    # Kaiming-normal init (nonlinearity='relu'): std = sqrt(2 / fan_in).
    fan_in = C * KH * KW
    weight = (jax.random.normal(k_w, (C, C, KH, KW), dtype=jnp.float32)
              * jnp.sqrt(2.0 / fan_in))

    ref = resblock_reference(x, weight)

    # f32 MXU path, one image per step (4 grid steps): algorithm validation.
    out_f32 = jax.block_until_ready(
        resblock_forward(x, weight, compute_dtype=jnp.float32,
                         images_per_step=1))
    assert out_f32.shape == (N, C, H, W)
    err_f32 = float(jnp.max(jnp.abs(out_f32 - ref)))
    assert err_f32 < 1e-3, err_f32

    # bf16 MXU path, two images per step (2 grid steps): perf configuration.
    # Only the conv operands are bf16; residual / BN stats / accumulation f32.
    out_bf16 = jax.block_until_ready(
        resblock_forward(x, weight, compute_dtype=jnp.bfloat16,
                         images_per_step=2))
    assert out_bf16.shape == (N, C, H, W)
    err_bf16 = float(jnp.max(jnp.abs(out_bf16 - ref)))
    assert err_bf16 < 6e-2, err_bf16

    print("KERNEL_OK")
</pallas_src>

<mosaic_0001>
module attributes {stable_mosaic.version = 11 : i64} {
  func.func @_stats_kernel(%arg0: i32, %arg1: memref<1x17x17x16xf32, #tpu.memory_space<vmem>>, %arg2: memref<4x16x16xf32, #tpu.memory_space<vmem>>, %arg3: memref<1x1x16xf32, #tpu.memory_space<vmem>>, %arg4: memref<1x1x16xf32, #tpu.memory_space<vmem>>) attributes {dimension_semantics = [#tpu.dimension_semantics<parallel>], iteration_bounds = array<i64: 4>, scalar_prefetch = 0 : i64, scratch_operands = 0 : i64, tpu.core_type = #tpu.core_type<tc>, window_params = [{transform_indices = @transform_0, window_bounds = array<i64: 1, 17, 17, 16>}, {pipeline_mode = #tpu.pipeline_mode<synchronous>, transform_indices = @transform_1, window_bounds = array<i64: 4, 16, 16>}, {transform_indices = @transform_2, window_bounds = array<i64: 1, 1, 16>}, {transform_indices = @transform_3, window_bounds = array<i64: 1, 1, 16>}]} {
    %cst = arith.constant 0.000000e+00 : f32
    %0 = vector.broadcast %cst : f32 to vector<1x16xf32>
    %cst_0 = arith.constant 0.000000e+00 : f32
    %1 = vector.broadcast %cst_0 : f32 to vector<1x16xf32>
    %cst_1 = arith.constant 0.000000e+00 : f32
    %2 = vector.broadcast %cst_1 : f32 to vector<256x16xf32>
    %c0_i32 = arith.constant 0 : i32
    %c0_i32_2 = arith.constant 0 : i32
    %c0_i32_3 = arith.constant 0 : i32
    %c0_i32_4 = arith.constant 0 : i32
    %3 = tpu.memref_slice %arg1[%c0_i32, %c0_i32_2, %c0_i32_3, %c0_i32_4] : memref<1x17x17x16xf32, #tpu.memory_space<vmem>> -> memref<1x17x17x16xf32, #tpu.memory_space<vmem>>
    %4 = tpu.memref_squeeze %3 : memref<1x17x17x16xf32, #tpu.memory_space<vmem>> -> memref<17x17x16xf32, #tpu.memory_space<vmem>>
    %c0 = arith.constant 0 : index
    %c0_5 = arith.constant 0 : index
    %c0_6 = arith.constant 0 : index
    %5 = vector.load %4[%c0, %c0_5, %c0_6] : memref<17x17x16xf32, #tpu.memory_space<vmem>>, vector<16x16x16xf32>
    %6 = vector.shape_cast %5 : vector<16x16x16xf32> to vector<256x16xf32>
    %c0_7 = arith.constant 0 : index
    %c0_8 = arith.constant 0 : index
    %c0_9 = arith.constant 0 : index
    %7 = vector.load %arg2[%c0_7, %c0_8, %c0_9] : memref<4x16x16xf32, #tpu.memory_space<vmem>>, vector<1x16x16xf32>
    %8 = vector.shape_cast %7 : vector<1x16x16xf32> to vector<16x16xf32>
    %cst_10 = arith.constant dense<0.000000e+00> : vector<256x16xf32>
    %9 = tpu.matmul %6, %8, %cst_10 {dimension_numbers = #tpu.dot_dimension_numbers<[1], [0], [0], [1], [0, 0, 1, 1], [], []>} : vector<256x16xf32>, vector<16x16xf32>, vector<256x16xf32> -> vector<256x16xf32>
    %10 = arith.addf %2, %9 : vector<256x16xf32>
    %c0_i32_11 = arith.constant 0 : i32
    %c0_i32_12 = arith.constant 0 : i32
    %c0_i32_13 = arith.constant 0 : i32
    %c0_i32_14 = arith.constant 0 : i32
    %11 = tpu.memref_slice %arg1[%c0_i32_11, %c0_i32_12, %c0_i32_13, %c0_i32_14] : memref<1x17x17x16xf32, #tpu.memory_space<vmem>> -> memref<1x17x17x16xf32, #tpu.memory_space<vmem>>
    %12 = tpu.memref_squeeze %11 : memref<1x17x17x16xf32, #tpu.memory_space<vmem>> -> memref<17x17x16xf32, #tpu.memory_space<vmem>>
    %c0_15 = arith.constant 0 : index
    %c1 = arith.constant 1 : index
    %c0_16 = arith.constant 0 : index
    %13 = vector.load %12[%c0_15, %c1, %c0_16] : memref<17x17x16xf32, #tpu.memory_space<vmem>>, vector<16x16x16xf32>
    %14 = vector.shape_cast %13 : vector<16x16x16xf32> to vector<256x16xf32>
    %c1_17 = arith.constant 1 : index
    %c0_18 = arith.constant 0 : index
    %c0_19 = arith.constant 0 : index
    %15 = vector.load %arg2[%c1_17, %c0_18, %c0_19] : memref<4x16x16xf32, #tpu.memory_space<vmem>>, vector<1x16x16xf32>
    %16 = vector.shape_cast %15 : vector<1x16x16xf32> to vector<16x16xf32>
    %cst_20 = arith.constant dense<0.000000e+00> : vector<256x16xf32>
    %17 = tpu.matmul %14, %16, %cst_20 {dimension_numbers = #tpu.dot_dimension_numbers<[1], [0], [0], [1], [0, 0, 1, 1], [], []>} : vector<256x16xf32>, vector<16x16xf32>, vector<256x16xf32> -> vector<256x16xf32>
    %18 = arith.addf %10, %17 : vector<256x16xf32>
    %c0_i32_21 = arith.constant 0 : i32
    %c0_i32_22 = arith.constant 0 : i32
    %c0_i32_23 = arith.constant 0 : i32
    %c0_i32_24 = arith.constant 0 : i32
    %19 = tpu.memref_slice %arg1[%c0_i32_21, %c0_i32_22, %c0_i32_23, %c0_i32_24] : memref<1x17x17x16xf32, #tpu.memory_space<vmem>> -> memref<1x17x17x16xf32, #tpu.memory_space<vmem>>
    %20 = tpu.memref_squeeze %19 : memref<1x17x17x16xf32, #tpu.memory_space<vmem>> -> memref<17x17x16xf32, #tpu.memory_space<vmem>>
    %c1_25 = arith.constant 1 : index
    %c0_26 = arith.constant 0 : index
    %c0_27 = arith.constant 0 : index
    %21 = vector.load %20[%c1_25, %c0_26, %c0_27] : memref<17x17x16xf32, #tpu.memory_space<vmem>>, vector<16x16x16xf32>
    %22 = vector.shape_cast %21 : vector<16x16x16xf32> to vector<256x16xf32>
    %c2 = arith.constant 2 : index
    %c0_28 = arith.constant 0 : index
    %c0_29 = arith.constant 0 : index
    %23 = vector.load %arg2[%c2, %c0_28, %c0_29] : memref<4x16x16xf32, #tpu.memory_space<vmem>>, vector<1x16x16xf32>
    %24 = vector.shape_cast %23 : vector<1x16x16xf32> to vector<16x16xf32>
    %cst_30 = arith.constant dense<0.000000e+00> : vector<256x16xf32>
    %25 = tpu.matmul %22, %24, %cst_30 {dimension_numbers = #tpu.dot_dimension_numbers<[1], [0], [0], [1], [0, 0, 1, 1], [], []>} : vector<256x16xf32>, vector<16x16xf32>, vector<256x16xf32> -> vector<256x16xf32>
    %26 = arith.addf %18, %25 : vector<256x16xf32>
    %c0_i32_31 = arith.constant 0 : i32
    %c0_i32_32 = arith.constant 0 : i32
    %c0_i32_33 = arith.constant 0 : i32
    %c0_i32_34 = arith.constant 0 : i32
    %27 = tpu.memref_slice %arg1[%c0_i32_31, %c0_i32_32, %c0_i32_33, %c0_i32_34] : memref<1x17x17x16xf32, #tpu.memory_space<vmem>> -> memref<1x17x17x16xf32, #tpu.memory_space<vmem>>
    %28 = tpu.memref_squeeze %27 : memref<1x17x17x16xf32, #tpu.memory_space<vmem>> -> memref<17x17x16xf32, #tpu.memory_space<vmem>>
    %c1_35 = arith.constant 1 : index
    %c1_36 = arith.constant 1 : index
    %c0_37 = arith.constant 0 : index
    %29 = vector.load %28[%c1_35, %c1_36, %c0_37] : memref<17x17x16xf32, #tpu.memory_space<vmem>>, vector<16x16x16xf32>
    %30 = vector.shape_cast %29 : vector<16x16x16xf32> to vector<256x16xf32>
    %c3 = arith.constant 3 : index
    %c0_38 = arith.constant 0 : index
    %c0_39 = arith.constant 0 : index
    %31 = vector.load %arg2[%c3, %c0_38, %c0_39] : memref<4x16x16xf32, #tpu.memory_space<vmem>>, vector<1x16x16xf32>
    %32 = vector.shape_cast %31 : vector<1x16x16xf32> to vector<16x16xf32>
    %cst_40 = arith.constant dense<0.000000e+00> : vector<256x16xf32>
    %33 = tpu.matmul %30, %32, %cst_40 {dimension_numbers = #tpu.dot_dimension_numbers<[1], [0], [0], [1], [0, 0, 1, 1], [], []>} : vector<256x16xf32>, vector<16x16xf32>, vector<256x16xf32> -> vector<256x16xf32>
    %34 = arith.addf %26, %33 : vector<256x16xf32>
    %cst_41 = arith.constant dense<0.000000e+00> : vector<16xf32>
    %35 = vector.multi_reduction <add>, %34, %cst_41 [0] : vector<256x16xf32> to vector<16xf32>
    %36 = vector.shape_cast %35 : vector<16xf32> to vector<1x16xf32>
    %37 = arith.addf %0, %36 : vector<1x16xf32>
    %38 = arith.mulf %34, %34 : vector<256x16xf32>
    %cst_42 = arith.constant dense<0.000000e+00> : vector<16xf32>
    %39 = vector.multi_reduction <add>, %38, %cst_42 [0] : vector<256x16xf32> to vector<16xf32>
    %40 = vector.shape_cast %39 : vector<16xf32> to vector<1x16xf32>
    %41 = arith.addf %1, %40 : vector<1x16xf32>
    %c0_43 = arith.constant 0 : index
    %c0_44 = arith.constant 0 : index
    %c0_45 = arith.constant 0 : index
    %42 = vector.load %arg3[%c0_43, %c0_44, %c0_45] : memref<1x1x16xf32, #tpu.memory_space<vmem>>, vector<1x1x16xf32>
    %43 = vector.shape_cast %42 : vector<1x1x16xf32> to vector<1x16xf32>
    %44 = vector.shape_cast %37 : vector<1x16xf32> to vector<1x1x16xf32>
    tpu.vector_store %arg3[%c0_43, %c0_44, %c0_45], %44 {strides = array<i32>} : memref<1x1x16xf32, #tpu.memory_space<vmem>>, vector<1x1x16xf32>,
    %c0_46 = arith.constant 0 : index
    %c0_47 = arith.constant 0 : index
    %c0_48 = arith.constant 0 : index
    %45 = vector.load %arg4[%c0_46, %c0_47, %c0_48] : memref<1x1x16xf32, #tpu.memory_space<vmem>>, vector<1x1x16xf32>
    %46 = vector.shape_cast %45 : vector<1x1x16xf32> to vector<1x16xf32>
    %47 = vector.shape_cast %41 : vector<1x16xf32> to vector<1x1x16xf32>
    tpu.vector_store %arg4[%c0_46, %c0_47, %c0_48], %47 {strides = array<i32>} : memref<1x1x16xf32, #tpu.memory_space<vmem>>, vector<1x1x16xf32>,
    return
  }
  func.func @transform_0(%arg0: i32) -> (i32, i32, i32, i32) {
    %c0_i32 = arith.constant 0 : i32
    %c0_i32_0 = arith.constant 0 : i32
    %c0_i32_1 = arith.constant 0 : i32
    %c0_i32_2 = arith.constant 0 : i32
    return %arg0, %c0_i32, %c0_i32_0, %c0_i32_1 : i32, i32, i32, i32
  }
  func.func @transform_1(%arg0: i32) -> (i32, i32, i32) {
    %c0_i32 = arith.constant 0 : i32
    %c0_i32_0 = arith.constant 0 : i32
    %c0_i32_1 = arith.constant 0 : i32
    %c0_i32_2 = arith.constant 0 : i32
    return %c0_i32, %c0_i32_0, %c0_i32_1 : i32, i32, i32
  }
  func.func @transform_2(%arg0: i32) -> (i32, i32, i32) {
    %c0_i32 = arith.constant 0 : i32
    %c0_i32_0 = arith.constant 0 : i32
    %c0_i32_1 = arith.constant 0 : i32
    return %arg0, %c0_i32, %c0_i32_0 : i32, i32, i32
  }
  func.func @transform_3(%arg0: i32) -> (i32, i32, i32) {
    %c0_i32 = arith.constant 0 : i32
    %c0_i32_0 = arith.constant 0 : i32
    %c0_i32_1 = arith.constant 0 : i32
    return %arg0, %c0_i32, %c0_i32_0 : i32, i32, i32
  }
}

</mosaic_0001>

<bundles_post_ra>
// kernel: tpu_custom_call.1
= control target key start
LH: loop header
LB: loop body
LE: loop exit
PB: predicated region body
PF: predicated region fallthrough
CT: control target
= control target key end

     0   :  { %9 = vsyncpa [#allocation3], 0  ;;  %s3447_s0 = inlined_call_operand.vmem [shape: f32[4,17,17,16], index: 0, kind: input, shape index: {}]   ;;  %s3448_s1 = inlined_call_operand.vmem [shape: f32[4,16,16], index: 1, kind: input, shape index: {}]   ;;  %s3449_s2 = inlined_call_operand.hbm [shape: f32[4,1,16], index: 2, kind: output, shape index: {0}]   ;;  %s3450_s3 = inlined_call_operand.hbm [shape: f32[4,1,16], index: 3, kind: output, shape index: {1}]  }
   0x1   :  { %11 = vsyncpa [#allocation3 + $0x1], 0 }
   0x2   :  { %12 = vsyncpa [#allocation5], 0 }
   0x3   :  { %14 = vsyncpa [#allocation5 + $0x1], 0  ;;  %s2781_s12 = smov 0   ;;  %s2783_s13 = smov 0  }
   0x4   :  { %s2785_s14 = smov 0   ;;  %s2787_s15 = smov 0  }
   0x5 LB: > { %s2802_s16 = sadd.s32 4294967295, %s2757_s15   ;;  %s1955_s17 = sadd.s32 4294967294, %s2757_s15   ;;  %s2757_s15 = sphi %s2787_s15, %s3456_s15   ;;  %s2753_s14 = sphi %s2785_s14, %s3455_s14   ;;  %s2749_s13 = sphi %s2783_s13, %s3454_s13   ;;  %s2745_s12 = sphi %s2781_s12, %s3453_s12  }
   0x6   : > { %s2806_s18 = sadd.s32 1, %s2757_s15   ;;  %s74_s19 = sadd.s32 1, %s2753_s14 }
   0x7   : > { %s71_s20 = ssub.s32 %s2757_s15, %s2806_s18  ;;  %p84_p0 = scmp.ne.s32.totalorder %s2753_s14, %s2749_s13 }
   0x8   : > { %p72_p1 = scmp.eq.s32.totalorder %s71_s20, 0  ;;  %p85_p2 = scmp.eq.s32.totalorder %s2802_s16, 3 }
   0x9   : > { %p90_p3 = scmp.ne.s32.totalorder %s2749_s13, %s2745_s12  ;;  %p91_p4 = scmp.eq.s32.totalorder %s1955_s17, 3 }
   0xa   : > { %s2817_s21 = scalar_select %p72_p1, %s2753_s14, %s74_s19  }
   0xb   : > { %p2819_p5 = por %p85_p2, %p84_p0  ;;  %p2823_p6 = por %p91_p4, %p90_p3 }
   0xc   : > { %p1958_p7 = scmp.ge.s32.totalorder %s2757_s15, 1  ;;  %p146_p8 = scmp.lt.s32.totalorder %s2757_s15, 5 }
   0xe   : > { %p147_p9 = pnand %p1958_p7, %p146_p8 }
   0xf   : > { %v1960_v0 = vld [vmem:[%s3448_s1 + $0x10] sm:$0xff] (!%p147_p9)  ;;  %v1961_v1 = vld [vmem:[%s3448_s1 + $0x18] sm:$0xff] (!%p147_p9)  ;;  %v2058_v2 = vld [vmem:[%s3448_s1 + $0x20] sm:$0xff] (!%p147_p9)  ;;  %p173_p10 = scmp.lt.s32.totalorder (!%p147_p9), %s2802_s16, 3  ;;  %vm247_vm0 = vcmask (!%p147_p9), 130048   ;;  %s3361_s27 = sand.u32 (!%p147_p9), 1, %s2749_s13  }
  0x10   : > { %150 = sbr.rel (%p147_p9) target bundleno = 423 (0x1a7), region = 28  ;;  %v2506_v3 = vpack.c.bf16 (!%p147_p9), %v1961_v1, %v1960_v0  ;;  %v2059_v4 = vld [vmem:[%s3448_s1 + $0x28] sm:$0xff] (!%p147_p9)  ;;  %v210_v5 = vld [vmem:[%s3448_s1] sm:$0xff] (!%p147_p9)  ;;  %v2124_v9 = vld [vmem:[%s3448_s1 + $0x30] sm:$0xff] (!%p147_p9)  ;;  %s2158_s28 = sshll.u32 (!%p147_p9), %s2802_s16, 4  ;;  %vm1839_vm1 = vcmask (!%p147_p9), 122880  }
  0x11   : > { %v211_v6 = vld [vmem:[%s3448_s1 + $0x8] sm:$0xff] (!%p147_p9)  ;;  %v2514_v7 = vpack.c.bf16 (!%p147_p9), %v2059_v4, %v2058_v2  ;;  %v2125_v10 = vld [vmem:[%s3448_s1 + $0x38] sm:$0xff] (!%p147_p9)  ;;  %s166_s29 = scalar_lea.vmem (!%p147_p9), [#allocation2], %s3361_s27  ;;  %s172_s4 = scalar_lea.vmem (!%p147_p9), [#allocation4], %s3361_s27 }
  0x12   : > { %v2510_v8 = vpack.c.bf16 (!%p147_p9), %v211_v6, %v210_v5  ;;  %2507 = vmatprep.subr.bf16.mxu1 (!%p147_p9), %v2506_v3  ;;  %v2518_v11 = vpack.c.bf16 (!%p147_p9), %v2125_v10, %v2124_v9  ;;  %s1859_s30 = sshll.u32 (!%p147_p9), %s166_s29, 4  ;;  %s1872_s5 = sshll.u32 (!%p147_p9), %s172_s4, 4  ;;  %s3373_s30 = int_to_ptr.vmem [resolvable:$true] %s1859_s30  ;;  %s3381_s5 = int_to_ptr.vmem [resolvable:$true] %s1872_s5 }
  0x13   : > { %2515 = vmatprep.subr.bf16.mxu0 (!%p147_p9), %v2514_v7  ;;  %2509 = vmatpush3.bf16.msra.mxu1 (!%p147_p9), %v2506_v3  ;;  %s3371_s8 = scalar_lea.hbm (!%p147_p9), %s3449_s2, %s2158_s28  ;;  %s3379_s10 = scalar_lea.hbm (!%p147_p9), %s3450_s3, %s2158_s28 }
  0x14   : > { %2517 = vmatpush3.bf16.msra.mxu0 (!%p147_p9), %v2514_v7  ;;  %2511 = vmatprep.subr.bf16.mxu1 (!%p147_p9), %v2510_v8  ;;  %s1843_s11 = scalar_lea.sflag (!%p147_p9), [#allocation3], %s3361_s27  ;;  %s2663_s17 = scalar_lea.vmem (!%p147_p9), %s3373_s30, 16 }
  0x15   : > { %2519 = vmatprep.subr.bf16.mxu0 (!%p147_p9), %v2518_v11  ;;  %p2664_p11 = scmp.ne.s32.totalorder (!%p147_p9), %s3373_s30, %s2663_s17  ;;  %s2759_s19 = smov (!%p147_p9), [#allocation2]  }
  0x17   : > { %s174_s9 = scalar_select %p173_p10, %s2802_s16, 3 }
  0x18   : > { %p2665_p12 = pnand %p2664_p11, %p2819_p5 }
  0x19   : > { %s2618_s20 = smul.u32 408, %s174_s9 }
  0x1a   : > { %p2666_p13 = pneg %p2665_p12 }
  0x1b   : > { %s2858_s26 = scalar_lea.vmem %s3447_s0, %s2618_s20  ;;  %s2667_s20 = sshll.u32 %s2759_s19, 4  ;;  %s2668_s20 = int_to_ptr.vmem [resolvable:$false] %s2667_s20 }
  0x1c   : > { %v212_v12 = vld [vmem:[%s2858_s26 + $0x1] sm:$0xff]  ;;  %v2862_v13 = vld [vmem:[%s2858_s26 + $0x18] sm:$0xff]  ;;  %v213_v14 = vld [vmem:[%s2858_s26 + $0x9] sm:$0xff]  ;;  %s2669_s24 = scalar_lea.vmem %s2668_s20, 32  ;;  %p2670_p0 = scmp.lt.s32.totalorder %s3373_s30, %s2668_s20 }
  0x1d   : > { %2302 = vmatprep.mubr.msk.f32.mxu1 %vm247_vm0, %v212_v12  ;;  %2406 = vmatprep.mubr.msk.f32.mxu0 %vm247_vm0, %v2862_v13  ;;  %v2869_v15 = vld [vmem:[%s2858_s26 + $0x20] sm:$0xff]  ;;  %v2875_v17 = vld [vmem:[%s2858_s26 + $0x30] sm:$0xff]  ;;  %v2884_v19 = vld [vmem:[%s2858_s26 + $0x38] sm:$0xff]  ;;  %p2671_p1 = scmp.lt.s32.totalorder %s2669_s24, %s2663_s17 }
  0x1e   : > { %v2872_v16 = vld [vmem:[%s2858_s26 + $0x19] sm:$0xff]  ;;  %2303 = vmatmul.mubr.msk.f32.vlgmr.msra.gmra.mrb[0].mxu1 %vm247_vm0, %v213_v14  ;;  %2407 = vmatmul.mubr.msk.f32.vlgmr.msra.gmra.mrb[0].mxu0 %vm247_vm0, %v2869_v15  ;;  %v2881_v18 = vld [vmem:[%s2858_s26 + $0x21] sm:$0xff]  ;;  %v2891_v20 = vld [vmem:[%s2858_s26 + $0x31] sm:$0xff] }
  0x1f   : > { %2513 = vmatpush3.bf16.msra.mxu1 %v2510_v8  ;;  %2521 = vmatpush3.bf16.msra.mxu0 %v2518_v11  ;;  %v2894_v21 = vld [vmem:[%s2858_s26 + $0x48] sm:$0xff]  ;;  %v2905_v22 = vld [vmem:[%s2858_s26 + $0x39] sm:$0xff]  ;;  %v2908_v23 = vld [vmem:[%s2858_s26 + $0x50] sm:$0xff]  ;;  %p2672_p2 = por %p2671_p1, %p2670_p0 }
  0x20   : > { %2305 = vmatprep.mubr.msk.f32.mxu1 %vm247_vm0, %v2872_v16  ;;  %2409 = vmatprep.mubr.msk.f32.mxu0 %vm247_vm0, %v2875_v17  ;;  %v2911_v24 = vld [vmem:[%s2858_s26 + $0x49] sm:$0xff]  ;;  %v2914_v25 = vld [vmem:[%s2858_s26 + $0x60] sm:$0xff]  ;;  %v2925_v26 = vld [vmem:[%s2858_s26 + $0x51] sm:$0xff] }
  0x21   : > { %v2928_v27 = vld [vmem:[%s2858_s26 + $0x68] sm:$0xff]  ;;  %v2934_v29 = vld [vmem:[%s2858_s26 + $0x78] sm:$0xff]  ;;  %v2948_v31 = vld [vmem:[%s2858_s26 + $0x80] sm:$0xff]  ;;  %p2673_p3 = pnand %p2672_p2, %p2666_p13 }
  0x22   : > { %2306 = vmatmul.mubr.msk.f32.gmra.mrb[2].mxu1 %vm247_vm0, %v2881_v18  ;;  %2410 = vmatmul.mubr.msk.f32.gmra.mrb[2].mxu0 %vm247_vm0, %v2884_v19  ;;  %v2931_v28 = vld [vmem:[%s2858_s26 + $0x61] sm:$0xff]  ;;  %v2945_v30 = vld [vmem:[%s2858_s26 + $0x69] sm:$0xff]  ;;  %v2951_v32 = vld [vmem:[%s2858_s26 + $0x79] sm:$0xff] }
  0x23   : > { %2308 = vmatprep.mubr.msk.f32.mxu1 %vm247_vm0, %v2891_v20  ;;  %2412 = vmatprep.mubr.msk.f32.mxu0 %vm247_vm0, %v2894_v21  ;;  %v2954_v33 = vld [vmem:[%s2858_s26 + $0x90] sm:$0xff]  ;;  %v2965_v34 = vld [vmem:[%s2858_s26 + $0x81] sm:$0xff]  ;;  %v2968_v35 = vld [vmem:[%s2858_s26 + $0x98] sm:$0xff] }
  0x24   : > { %v2971_v36 = vld [vmem:[%s2858_s26 + $0x91] sm:$0xff]  ;;  %v2974_v37 = vld [vmem:[%s2858_s26 + $0xa8] sm:$0xff]  ;;  %v2985_v38 = vld [vmem:[%s2858_s26 + $0x99] sm:$0xff] }
  0x25   : > { %v2988_v39 = vld [vmem:[%s2858_s26 + $0xb0] sm:$0xff]  ;;  %v2994_v41 = vld [vmem:[%s2858_s26 + $0xc0] sm:$0xff]  ;;  %v3008_v43 = vld [vmem:[%s2858_s26 + $0xc8] sm:$0xff] }
  0x26   : > { %2309 = vmatmul.mubr.msk.f32.gmra.mrb[4].mxu1 %vm247_vm0, %v2905_v22  ;;  %2413 = vmatmul.mubr.msk.f32.gmra.mrb[4].mxu0 %vm247_vm0, %v2908_v23  ;;  %v2991_v40 = vld [vmem:[%s2858_s26 + $0xa9] sm:$0xff]  ;;  %v3005_v42 = vld [vmem:[%s2858_s26 + $0xb1] sm:$0xff]  ;;  %v3011_v44 = vld [vmem:[%s2858_s26 + $0xc1] sm:$0xff] }
  0x27   : > { %2311 = vmatprep.mubr.msk.f32.mxu1 %vm247_vm0, %v2911_v24  ;;  %2415 = vmatprep.mubr.msk.f32.mxu0 %vm247_vm0, %v2914_v25  ;;  %v3014_v45 = vld [vmem:[%s2858_s26 + $0xd8] sm:$0xff]  ;;  %v3025_v46 = vld [vmem:[%s2858_s26 + $0xc9] sm:$0xff]  ;;  %v3028_v47 = vld [vmem:[%s2858_s26 + $0xe0] sm:$0xff] }
  0x28   : > { %v3031_v48 = vld [vmem:[%s2858_s26 + $0xd9] sm:$0xff]  ;;  %v3034_v49 = vld [vmem:[%s2858_s26 + $0xf0] sm:$0xff]  ;;  %v3045_v50 = vld [vmem:[%s2858_s26 + $0xe1] sm:$0xff] }
  0x29   : > { %v3048_v51 = vld [vmem:[%s2858_s26 + $0xf8] sm:$0xff]  ;;  %v3054_v53 = vld [vmem:[%s2858_s26 + $0x108] sm:$0xff]  ;;  %v3068_v55 = vld [vmem:[%s2858_s26 + $0x110] sm:$0xff] }
  0x2a   : > { %2312 = vmatmul.mubr.msk.f32.gmra.mrb[6].mxu1 %vm247_vm0, %v2925_v26  ;;  %2416 = vmatmul.mubr.msk.f32.gmra.mrb[6].mxu0 %vm247_vm0, %v2928_v27  ;;  %v3051_v52 = vld [vmem:[%s2858_s26 + $0xf1] sm:$0xff]  ;;  %v3065_v54 = vld [vmem:[%s2858_s26 + $0xf9] sm:$0xff]  ;;  %v3071_v56 = vld [vmem:[%s2858_s26 + $0x109] sm:$0xff] }
  0x2b   : > { %2314 = vmatprep.mubr.msk.f32.mxu1 %vm247_vm0, %v2931_v28  ;;  %2418 = vmatprep.mubr.msk.f32.mxu0 %vm247_vm0, %v2934_v29  ;;  %v3074_v57 = vld [vmem:[%s2858_s26 + $0x120] sm:$0xff]  ;;  %v3085_v58 = vld [vmem:[%s2858_s26 + $0x111] sm:$0xff]  ;;  %v3088_v59 = vld [vmem:[%s2858_s26 + $0x128] sm:$0xff] }
  0x2c   : > { %v3091_v60 = vld [vmem:[%s2858_s26 + $0x121] sm:$0xff]  ;;  %v3094_v61 = vld [vmem:[%s2858_s26 + $0x138] sm:$0xff]  ;;  %v3105_v62 = vld [vmem:[%s2858_s26 + $0x129] sm:$0xff] }
  0x2d   : > { %v3108_v63 = vld [vmem:[%s2858_s26 + $0x140] sm:$0xff]  ;;  %v3114_v1 = vld [vmem:[%s2858_s26 + $0x150] sm:$0xff]  ;;  %v3128_v3 = vld [vmem:[%s2858_s26 + $0x158] sm:$0xff] }
  0x2e   : > { %2315 = vmatmul.mubr.msk.f32.gmra.mrb[8].mxu1 %vm247_vm0, %v2945_v30  ;;  %2419 = vmatmul.mubr.msk.f32.gmra.mrb[8].mxu0 %vm247_vm0, %v2948_v31  ;;  %v3111_v0 = vld [vmem:[%s2858_s26 + $0x139] sm:$0xff]  ;;  %v3125_v2 = vld [vmem:[%s2858_s26 + $0x141] sm:$0xff]  ;;  %v3131_v4 = vld [vmem:[%s2858_s26 + $0x151] sm:$0xff] }
  0x2f   : > { %2317 = vmatprep.mubr.msk.f32.mxu1 %vm247_vm0, %v2951_v32  ;;  %2421 = vmatprep.mubr.msk.f32.mxu0 %vm247_vm0, %v2954_v33  ;;  %v3134_v5 = vld [vmem:[%s2858_s26 + $0x168] sm:$0xff]  ;;  %v3145_v6 = vld [vmem:[%s2858_s26 + $0x159] sm:$0xff]  ;;  %v3148_v7 = vld [vmem:[%s2858_s26 + $0x170] sm:$0xff] }
  0x30   : > { %v3151_v8 = vld [vmem:[%s2858_s26 + $0x169] sm:$0xff]  ;;  %v2056_v9 = vld [vmem:[%s2858_s26 + $0x180] sm:$0xff]  ;;  %v3162_v10 = vld [vmem:[%s2858_s26 + $0x171] sm:$0xff] }
  0x31   : > { %v2057_v11 = vld [vmem:[%s2858_s26 + $0x188] sm:$0xff]  ;;  %v178_v12 = vld [vmem:[%s2858_s26] sm:$0xff] }
  0x32   : > { %2318 = vmatmul.mubr.msk.f32.gmra.mrb[10].mxu1 %vm247_vm0, %v2965_v34  ;;  %2422 = vmatmul.mubr.msk.f32.gmra.mrb[10].mxu0 %vm247_vm0, %v2968_v35  ;;  %v179_v14 = vld [vmem:[%s2858_s26 + $0x8] sm:$0xff] }
  0x33   : > { %2320 = vmatprep.mubr.msk.f32.mxu1 %vm247_vm0, %v2971_v36  ;;  %2424 = vmatprep.mubr.msk.f32.mxu0 %vm247_vm0, %v2974_v37 }
  0x36   : > { %2321 = vmatmul.mubr.msk.f32.gmra.mrb[12].mxu1 %vm247_vm0, %v2985_v38  ;;  %2425 = vmatmul.mubr.msk.f32.gmra.mrb[12].mxu0 %vm247_vm0, %v2988_v39 }
  0x37   : > { %2323 = vmatprep.mubr.msk.f32.mxu1 %vm247_vm0, %v2991_v40  ;;  %2427 = vmatprep.mubr.msk.f32.mxu0 %vm247_vm0, %v2994_v41 }
  0x3a   : > { %2324 = vmatmul.mubr.msk.f32.gmra.mrb[14].mxu1 %vm247_vm0, %v3005_v42  ;;  %2428 = vmatmul.mubr.msk.f32.gmra.mrb[14].mxu0 %vm247_vm0, %v3008_v43 }
  0x3b   : > { %2326 = vmatprep.mubr.msk.f32.mxu1 %vm247_vm0, %v3011_v44  ;;  %2430 = vmatprep.mubr.msk.f32.mxu0 %vm247_vm0, %v3014_v45 }
  0x3e   : > { %2327 = vmatmul.mubr.msk.f32.gmra.mrb[16].mxu1 %vm247_vm0, %v3025_v46  ;;  %2431 = vmatmul.mubr.msk.f32.gmra.mrb[16].mxu0 %vm247_vm0, %v3028_v47 }
  0x3f   : > { %2329 = vmatprep.mubr.msk.f32.mxu1 %vm247_vm0, %v3031_v48  ;;  %2433 = vmatprep.mubr.msk.f32.mxu0 %vm247_vm0, %v3034_v49 }
  0x42   : > { %2330 = vmatmul.mubr.msk.f32.gmra.mrb[18].mxu1 %vm247_vm0, %v3045_v50  ;;  %2434 = vmatmul.mubr.msk.f32.gmra.mrb[18].mxu0 %vm247_vm0, %v3048_v51 }
  0x43   : > { %2332 = vmatprep.mubr.msk.f32.mxu1 %vm247_vm0, %v3051_v52  ;;  %2436 = vmatprep.mubr.msk.f32.mxu0 %vm247_vm0, %v3054_v53 }
  0x46   : > { %2333 = vmatmul.mubr.msk.f32.gmra.mrb[20].mxu1 %vm247_vm0, %v3065_v54  ;;  %2437 = vmatmul.mubr.msk.f32.gmra.mrb[20].mxu0 %vm247_vm0, %v3068_v55 }
  0x47   : > { %2335 = vmatprep.mubr.msk.f32.mxu1 %vm247_vm0, %v3071_v56  ;;  %2439 = vmatprep.mubr.msk.f32.mxu0 %vm247_vm0, %v3074_v57 }
  0x4a   : > { %2336 = vmatmul.mubr.msk.f32.gmra.mrb[22].mxu1 %vm247_vm0, %v3085_v58  ;;  %2440 = vmatmul.mubr.msk.f32.gmra.mrb[22].mxu0 %vm247_vm0, %v3088_v59 }
  0x4b   : > { %2338 = vmatprep.mubr.msk.f32.mxu1 %vm247_vm0, %v3091_v60  ;;  %2442 = vmatprep.mubr.msk.f32.mxu0 %vm247_vm0, %v3094_v61 }
  0x4e   : > { %2339 = vmatmul.mubr.msk.f32.gmra.mrb[24].mxu1 %vm247_vm0, %v3105_v62  ;;  %2443 = vmatmul.mubr.msk.f32.gmra.mrb[24].mxu0 %vm247_vm0, %v3108_v63 }
  0x4f   : > { %2341 = vmatprep.mubr.msk.f32.mxu1 %vm247_vm0, %v3111_v0  ;;  %2445 = vmatprep.mubr.msk.f32.mxu0 %vm247_vm0, %v3114_v1 }
  0x52   : > { %2342 = vmatmul.mubr.msk.f32.gmra.mrb[26].mxu1 %vm247_vm0, %v3125_v2  ;;  %2446 = vmatmul.mubr.msk.f32.gmra.mrb[26].mxu0 %vm247_vm0, %v3128_v3 }
  0x53   : > { %2344 = vmatprep.mubr.msk.f32.mxu1 %vm247_vm0, %v3131_v4  ;;  %2448 = vmatprep.mubr.msk.f32.mxu0 %vm247_vm0, %v3134_v5 }
  0x56   : > { %2345 = vmatmul.mubr.msk.f32.gmra.mrb[28].mxu1 %vm247_vm0, %v3145_v6  ;;  %2449 = vmatmul.mubr.msk.f32.gmra.mrb[28].mxu0 %vm247_vm0, %v3148_v7 }
  0x57   : > { %2347 = vmatprep.mubr.msk.f32.mxu1 %vm247_vm0, %v3151_v8  ;;  %2451 = vmatprep.mubr.msk.f32.mxu0 %vm247_vm0, %v2056_v9 }
  0x5a   : > { %2348 = vmatmul.mubr.msk.f32.gmra.mrb[30].mxu1 %vm247_vm0, %v3162_v10  ;;  %2452 = vmatmul.mubr.msk.f32.gmra.mrb[30].mxu0 %vm247_vm0, %v2057_v11 }
  0x5b   : > { %2354 = vmatprep.mubr.msk.f32.mxu1 %vm247_vm0, %v178_v12  ;;  %2458 = vmatprep.mubr.msk.f32.mxu0 %vm247_vm0, %v2872_v16 }
  0x5e   : > { %2355 = vmatmul.mubr.msk.f32.vlgmr.msra.gmra.mrb[0].mxu1 %vm247_vm0, %v179_v14  ;;  %2459 = vmatmul.mubr.msk.f32.vlgmr.msra.gmra.mrb[0].mxu0 %vm247_vm0, %v2881_v18 }
  0x5f   : > { %2357 = vmatprep.mubr.msk.f32.mxu1 %vm247_vm0, %v2862_v13  ;;  %2461 = vmatprep.mubr.msk.f32.mxu0 %vm247_vm0, %v2891_v20  ;;  %v2122_v13 = vld [vmem:[%s2858_s26 + $0x181] sm:$0xff] }
  0x62   : > { %2358 = vmatmul.mubr.msk.f32.gmra.mrb[2].mxu1 %vm247_vm0, %v2869_v15  ;;  %2462 = vmatmul.mubr.msk.f32.gmra.mrb[2].mxu0 %vm247_vm0, %v2905_v22  ;;  %v2123_v15 = vld [vmem:[%s2858_s26 + $0x189] sm:$0xff] }
  0x63   : > { %2360 = vmatprep.mubr.msk.f32.mxu1 %vm247_vm0, %v2875_v17  ;;  %2464 = vmatprep.mubr.msk.f32.mxu0 %vm247_vm0, %v2911_v24 }
  0x66   : > { %2361 = vmatmul.mubr.msk.f32.gmra.mrb[4].mxu1 %vm247_vm0, %v2884_v19  ;;  %2465 = vmatmul.mubr.msk.f32.gmra.mrb[4].mxu0 %vm247_vm0, %v2925_v26 }
  0x67   : > { %2363 = vmatprep.mubr.msk.f32.mxu1 %vm247_vm0, %v2894_v21  ;;  %2467 = vmatprep.mubr.msk.f32.mxu0 %vm247_vm0, %v2931_v28 }
  0x6a   : > { %2364 = vmatmul.mubr.msk.f32.gmra.mrb[6].mxu1 %vm247_vm0, %v2908_v23  ;;  %2468 = vmatmul.mubr.msk.f32.gmra.mrb[6].mxu0 %vm247_vm0, %v2945_v30 }
  0x6b   : > { %2366 = vmatprep.mubr.msk.f32.mxu1 %vm247_vm0, %v2914_v25  ;;  %2470 = vmatprep.mubr.msk.f32.mxu0 %vm247_vm0, %v2951_v32 }
  0x6e   : > { %2367 = vmatmul.mubr.msk.f32.gmra.mrb[8].mxu1 %vm247_vm0, %v2928_v27  ;;  %2471 = vmatmul.mubr.msk.f32.gmra.mrb[8].mxu0 %vm247_vm0, %v2965_v34 }
  0x6f   : > { %2369 = vmatprep.mubr.msk.f32.mxu1 %vm247_vm0, %v2934_v29  ;;  %2473 = vmatprep.mubr.msk.f32.mxu0 %vm247_vm0, %v2971_v36 }
  0x72   : > { %2370 = vmatmul.mubr.msk.f32.gmra.mrb[10].mxu1 %vm247_vm0, %v2948_v31  ;;  %2474 = vmatmul.mubr.msk.f32.gmra.mrb[10].mxu0 %vm247_vm0, %v2985_v38 }
  0x73   : > { %2372 = vmatprep.mubr.msk.f32.mxu1 %vm247_vm0, %v2954_v33  ;;  %2476 = vmatprep.mubr.msk.f32.mxu0 %vm247_vm0, %v2991_v40 }
  0x76   : > { %2373 = vmatmul.mubr.msk.f32.gmra.mrb[12].mxu1 %vm247_vm0, %v2968_v35  ;;  %2477 = vmatmul.mubr.msk.f32.gmra.mrb[12].mxu0 %vm247_vm0, %v3005_v42 }
  0x77   : > { %2375 = vmatprep.mubr.msk.f32.mxu1 %vm247_vm0, %v2974_v37  ;;  %2479 = vmatprep.mubr.msk.f32.mxu0 %vm247_vm0, %v3011_v44 }
  0x7a   : > { %2376 = vmatmul.mubr.msk.f32.gmra.mrb[14].mxu1 %vm247_vm0, %v2988_v39  ;;  %2480 = vmatmul.mubr.msk.f32.gmra.mrb[14].mxu0 %vm247_vm0, %v3025_v46 }
  0x7b   : > { %2378 = vmatprep.mubr.msk.f32.mxu1 %vm247_vm0, %v2994_v41  ;;  %2482 = vmatprep.mubr.msk.f32.mxu0 %vm247_vm0, %v3031_v48 }
  0x7e   : > { %2379 = vmatmul.mubr.msk.f32.gmra.mrb[16].mxu1 %vm247_vm0, %v3008_v43  ;;  %2483 = vmatmul.mubr.msk.f32.gmra.mrb[16].mxu0 %vm247_vm0, %v3045_v50 }
  0x7f   : > { %2381 = vmatprep.mubr.msk.f32.mxu1 %vm247_vm0, %v3014_v45  ;;  %2485 = vmatprep.mubr.msk.f32.mxu0 %vm247_vm0, %v3051_v52 }
  0x82   : > { %2382 = vmatmul.mubr.msk.f32.gmra.mrb[18].mxu1 %vm247_vm0, %v3028_v47  ;;  %2486 = vmatmul.mubr.msk.f32.gmra.mrb[18].mxu0 %vm247_vm0, %v3065_v54 }
  0x83   : > { %2384 = vmatprep.mubr.msk.f32.mxu1 %vm247_vm0, %v3034_v49  ;;  %2488 = vmatprep.mubr.msk.f32.mxu0 %vm247_vm0, %v3071_v56 }
  0x86   : > { %2385 = vmatmul.mubr.msk.f32.gmra.mrb[20].mxu1 %vm247_vm0, %v3048_v51  ;;  %2489 = vmatmul.mubr.msk.f32.gmra.mrb[20].mxu0 %vm247_vm0, %v3085_v58 }
  0x87   : > { %2387 = vmatprep.mubr.msk.f32.mxu1 %vm247_vm0, %v3054_v53  ;;  %2491 = vmatprep.mubr.msk.f32.mxu0 %vm247_vm0, %v3091_v60 }
  0x8a   : > { %2388 = vmatmul.mubr.msk.f32.gmra.mrb[22].mxu1 %vm247_vm0, %v3068_v55  ;;  %2492 = vmatmul.mubr.msk.f32.gmra.mrb[22].mxu0 %vm247_vm0, %v3105_v62 }
  0x8b   : > { %2390 = vmatprep.mubr.msk.f32.mxu1 %vm247_vm0, %v3074_v57  ;;  %2494 = vmatprep.mubr.msk.f32.mxu0 %vm247_vm0, %v3111_v0 }
  0x8e   : > { %2391 = vmatmul.mubr.msk.f32.gmra.mrb[24].mxu1 %vm247_vm0, %v3088_v59  ;;  %2495 = vmatmul.mubr.msk.f32.gmra.mrb[24].mxu0 %vm247_vm0, %v3125_v2 }
  0x8f   : > { %2393 = vmatprep.mubr.msk.f32.mxu1 %vm247_vm0, %v3094_v61  ;;  %2497 = vmatprep.mubr.msk.f32.mxu0 %vm247_vm0, %v3131_v4 }
  0x92   : > { %2394 = vmatmul.mubr.msk.f32.gmra.mrb[26].mxu1 %vm247_vm0, %v3108_v63  ;;  %2498 = vmatmul.mubr.msk.f32.gmra.mrb[26].mxu0 %vm247_vm0, %v3145_v6 }
  0x93   : > { %2396 = vmatprep.mubr.msk.f32.mxu1 %vm247_vm0, %v3114_v1  ;;  %2500 = vmatprep.mubr.msk.f32.mxu0 %vm247_vm0, %v3151_v8 }
  0x96   : > { %2397 = vmatmul.mubr.msk.f32.gmra.mrb[28].mxu1 %vm247_vm0, %v3128_v3  ;;  %2501 = vmatmul.mubr.msk.f32.gmra.mrb[28].mxu0 %vm247_vm0, %v3162_v10 }
  0x97   : > { %2399 = vmatprep.mubr.msk.f32.mxu1 %vm247_vm0, %v3134_v5  ;;  %2503 = vmatprep.mubr.msk.f32.mxu0 %vm247_vm0, %v2122_v13 }
  0x9a   : > { %2400 = vmatmul.mubr.msk.f32.gmra.mrb[30].mxu1 %vm247_vm0, %v3148_v7  ;;  %2504 = vmatmul.mubr.msk.f32.gmra.mrb[30].mxu0 %vm247_vm0, %v2123_v15 }
 0x131   : > { %v2356_v16 = vpop.f32.mrb[0].mxu1  ;;  %v2460_v17 = vpop.f32.mrb[0].mxu0 }
 0x132   : > { %v2522_v18 = vadd.f32 %v2460_v17, %v2356_v16  ;;  %v731_v19 = vpop.f32.mrb[1].mxu1  ;;  %v1476_v20 = vpop.f32.mrb[1].mxu0 }
 0x133   : > { %v2523_v21 = vadd.f32 %v1476_v20, %v731_v19 }
 0x134   : > { %v1668_v22 = vsel %vm247_vm0, %v2522_v18, 0.0  ;;  %v1738_v23 = vmul.f32 %v2522_v18, %v2522_v18 }
 0x135   : > { %v1667_v24 = vsel %vm247_vm0, %v2523_v21, 0.0  ;;  %v1737_v25 = vmul.f32 %v2523_v21, %v2523_v21  ;;  %v2359_v26 = vpop.f32.mrb[2].mxu1  ;;  %v2463_v27 = vpop.f32.mrb[2].mxu0 }
 0x136   : > { %v1770_v28 = vsel %vm247_vm0, %v1738_v23, 0.0  ;;  %v1669_v29 = vadd.f32 %v1668_v22, %v1667_v24  ;;  %v2524_v30 = vadd.f32 %v2463_v27, %v2359_v26  ;;  %v741_v31 = vpop.f32.mrb[3].mxu1  ;;  %v1486_v32 = vpop.f32.mrb[3].mxu0 }
 0x137   : > { %v1769_v33 = vsel %vm247_vm0, %v1737_v25, 0.0  ;;  %v2525_v34 = vadd.f32 %v1486_v32, %v741_v31 }
 0x138   : > { %v1771_v35 = vadd.f32 %v1770_v28, %v1769_v33  ;;  %v1740_v36 = vmul.f32 %v2524_v30, %v2524_v30  ;;  %v1672_v45 = vsel %vm247_vm0, %v2524_v30, 0.0 }
 0x139   : > { %v1670_v37 = vsel %vm247_vm0, %v2525_v34, 0.0  ;;  %v1739_v38 = vmul.f32 %v2525_v34, %v2525_v34  ;;  %v2362_v39 = vpop.f32.mrb[4].mxu1  ;;  %v2466_v40 = vpop.f32.mrb[4].mxu0 }
 0x13a   : > { %v1671_v41 = vadd.f32 %v1670_v37, %v1669_v29  ;;  %v2526_v42 = vadd.f32 %v2466_v40, %v2362_v39  ;;  %v751_v43 = vpop.f32.mrb[5].mxu1  ;;  %v1496_v44 = vpop.f32.mrb[5].mxu0  ;;  %v1774_v50 = vsel %vm247_vm0, %v1740_v36, 0.0 }
 0x13b   : > { %v1772_v46 = vsel %vm247_vm0, %v1739_v38, 0.0  ;;  %v2527_v47 = vadd.f32 %v1496_v44, %v751_v43 }
 0x13c   : > { %v1773_v48 = vadd.f32 %v1772_v46, %v1771_v35  ;;  %v1673_v49 = vadd.f32 %v1672_v45, %v1671_v41  ;;  %v1742_v51 = vmul.f32 %v2526_v42, %v2526_v42  ;;  %v1676_v61 = vsel %vm247_vm0, %v2526_v42, 0.0 }
 0x13d   : > { %v1674_v52 = vsel %vm247_vm0, %v2527_v47, 0.0  ;;  %v1741_v53 = vmul.f32 %v2527_v47, %v2527_v47  ;;  %v2365_v54 = vpop.f32.mrb[6].mxu1  ;;  %v2469_v55 = vpop.f32.mrb[6].mxu0 }
 0x13e   : > { %v1675_v56 = vadd.f32 %v1674_v52, %v1673_v49  ;;  %v1775_v57 = vadd.f32 %v1774_v50, %v1773_v48  ;;  %v2528_v58 = vadd.f32 %v2469_v55, %v2365_v54  ;;  %v761_v59 = vpop.f32.mrb[7].mxu1  ;;  %v1506_v60 = vpop.f32.mrb[7].mxu0  ;;  %v1778_v2 = vsel %vm247_vm0, %v1742_v51, 0.0 }
 0x13f   : > { %v1776_v62 = vsel %vm247_vm0, %v1741_v53, 0.0  ;;  %v2529_v63 = vadd.f32 %v1506_v60, %v761_v59 }
 0x140   : > { %v1777_v0 = vadd.f32 %v1776_v62, %v1775_v57  ;;  %v1677_v1 = vadd.f32 %v1676_v61, %v1675_v56  ;;  %v1744_v3 = vmul.f32 %v2528_v58, %v2528_v58  ;;  %v1680_v14 = vsel %vm247_vm0, %v2528_v58, 0.0 }
 0x141   : > { %v1678_v4 = vsel %vm247_vm0, %v2529_v63, 0.0  ;;  %v1743_v5 = vmul.f32 %v2529_v63, %v2529_v63  ;;  %v2368_v6 = vpop.f32.mrb[8].mxu1  ;;  %v2472_v7 = vpop.f32.mrb[8].mxu0 }
 0x142   : > { %v1679_v8 = vadd.f32 %v1678_v4, %v1677_v1  ;;  %v1779_v9 = vadd.f32 %v1778_v2, %v1777_v0  ;;  %v2530_v10 = vadd.f32 %v2472_v7, %v2368_v6  ;;  %v771_v11 = vpop.f32.mrb[9].mxu1  ;;  %v1516_v12 = vpop.f32.mrb[9].mxu0  ;;  %v1782_v18 = vsel %vm247_vm0, %v1744_v3, 0.0 }
 0x143   : > { %v1780_v13 = vsel %vm247_vm0, %v1743_v5, 0.0  ;;  %v2531_v15 = vadd.f32 %v1516_v12, %v771_v11 }
 0x144   : > { %v1781_v16 = vadd.f32 %v1780_v13, %v1779_v9  ;;  %v1681_v17 = vadd.f32 %v1680_v14, %v1679_v8  ;;  %v1746_v19 = vmul.f32 %v2530_v10, %v2530_v10  ;;  %v1684_v29 = vsel %vm247_vm0, %v2530_v10, 0.0 }
 0x145   : > { %v1682_v20 = vsel %vm247_vm0, %v2531_v15, 0.0  ;;  %v1745_v21 = vmul.f32 %v2531_v15, %v2531_v15  ;;  %v2371_v22 = vpop.f32.mrb[10].mxu1  ;;  %v2475_v23 = vpop.f32.mrb[10].mxu0 }
 0x146   : > { %v1683_v24 = vadd.f32 %v1682_v20, %v1681_v17  ;;  %v1783_v25 = vadd.f32 %v1782_v18, %v1781_v16  ;;  %v2532_v26 = vadd.f32 %v2475_v23, %v2371_v22  ;;  %v781_v27 = vpop.f32.mrb[11].mxu1  ;;  %v1526_v28 = vpop.f32.mrb[11].mxu0  ;;  %v1786_v34 = vsel %vm247_vm0, %v1746_v19, 0.0 }
 0x147   : > { %v1784_v30 = vsel %vm247_vm0, %v1745_v21, 0.0  ;;  %v2533_v31 = vadd.f32 %v1526_v28, %v781_v27 }
 0x148   : > { %v1785_v32 = vadd.f32 %v1784_v30, %v1783_v25  ;;  %v1685_v33 = vadd.f32 %v1684_v29, %v1683_v24  ;;  %v1748_v35 = vmul.f32 %v2532_v26, %v2532_v26  ;;  %v1688_v45 = vsel %vm247_vm0, %v2532_v26, 0.0 }
 0x149   : > { %v1686_v36 = vsel %vm247_vm0, %v2533_v31, 0.0  ;;  %v1747_v37 = vmul.f32 %v2533_v31, %v2533_v31  ;;  %v2374_v38 = vpop.f32.mrb[12].mxu1  ;;  %v2478_v39 = vpop.f32.mrb[12].mxu0 }
 0x14a   : > { %v1687_v40 = vadd.f32 %v1686_v36, %v1685_v33  ;;  %v1787_v41 = vadd.f32 %v1786_v34, %v1785_v32  ;;  %v2534_v42 = vadd.f32 %v2478_v39, %v2374_v38  ;;  %v791_v43 = vpop.f32.mrb[13].mxu1  ;;  %v1536_v44 = vpop.f32.mrb[13].mxu0  ;;  %v1790_v50 = vsel %vm247_vm0, %v1748_v35, 0.0 }
 0x14b   : > { %v1788_v46 = vsel %vm247_vm0, %v1747_v37, 0.0  ;;  %v2535_v47 = vadd.f32 %v1536_v44, %v791_v43 }
 0x14c   : > { %v1789_v48 = vadd.f32 %v1788_v46, %v1787_v41  ;;  %v1689_v49 = vadd.f32 %v1688_v45, %v1687_v40  ;;  %v1750_v51 = vmul.f32 %v2534_v42, %v2534_v42  ;;  %v1692_v61 = vsel %vm247_vm0, %v2534_v42, 0.0 }
 0x14d   : > { %v1690_v52 = vsel %vm247_vm0, %v2535_v47, 0.0  ;;  %v1749_v53 = vmul.f32 %v2535_v47, %v2535_v47  ;;  %v2377_v54 = vpop.f32.mrb[14].mxu1  ;;  %v2481_v55 = vpop.f32.mrb[14].mxu0 }
 0x14e   : > { %v1691_v56 = vadd.f32 %v1690_v52, %v1689_v49  ;;  %v1791_v57 = vadd.f32 %v1790_v50, %v1789_v48  ;;  %v2536_v58 = vadd.f32 %v2481_v55, %v2377_v54  ;;  %v801_v59 = vpop.f32.mrb[15].mxu1  ;;  %v1546_v60 = vpop.f32.mrb[15].mxu0  ;;  %v1794_v2 = vsel %vm247_vm0, %v1750_v51, 0.0 }
 0x14f   : > { %v1792_v62 = vsel %vm247_vm0, %v1749_v53, 0.0  ;;  %v2537_v63 = vadd.f32 %v1546_v60, %v801_v59 }
 0x150   : > { %v1793_v0 = vadd.f32 %v1792_v62, %v1791_v57  ;;  %v1693_v1 = vadd.f32 %v1692_v61, %v1691_v56  ;;  %v1752_v3 = vmul.f32 %v2536_v58, %v2536_v58  ;;  %v1696_v14 = vsel %vm247_vm0, %v2536_v58, 0.0 }
 0x151   : > { %v1694_v4 = vsel %vm247_vm0, %v2537_v63, 0.0  ;;  %v1751_v5 = vmul.f32 %v2537_v63, %v2537_v63  ;;  %v2380_v6 = vpop.f32.mrb[16].mxu1  ;;  %v2484_v7 = vpop.f32.mrb[16].mxu0 }
 0x152   : > { %v1695_v8 = vadd.f32 %v1694_v4, %v1693_v1  ;;  %v1795_v9 = vadd.f32 %v1794_v2, %v1793_v0  ;;  %v2538_v10 = vadd.f32 %v2484_v7, %v2380_v6  ;;  %v811_v11 = vpop.f32.mrb[17].mxu1  ;;  %v1556_v12 = vpop.f32.mrb[17].mxu0  ;;  %v1798_v18 = vsel %vm247_vm0, %v1752_v3, 0.0 }
 0x153   : > { %v1796_v13 = vsel %vm247_vm0, %v1751_v5, 0.0  ;;  %v2539_v15 = vadd.f32 %v1556_v12, %v811_v11 }
 0x154   : > { %v1797_v16 = vadd.f32 %v1796_v13, %v1795_v9  ;;  %v1697_v17 = vadd.f32 %v1696_v14, %v1695_v8  ;;  %v1754_v19 = vmul.f32 %v2538_v10, %v2538_v10  ;;  %v1700_v29 = vsel %vm247_vm0, %v2538_v10, 0.0 }
 0x155   : > { %v1698_v20 = vsel %vm247_vm0, %v2539_v15, 0.0  ;;  %v1753_v21 = vmul.f32 %v2539_v15, %v2539_v15  ;;  %v2383_v22 = vpop.f32.mrb[18].mxu1  ;;  %v2487_v23 = vpop.f32.mrb[18].mxu0 }
 0x156   : > { %v1699_v24 = vadd.f32 %v1698_v20, %v1697_v17  ;;  %v1799_v25 = vadd.f32 %v1798_v18, %v1797_v16  ;;  %v2540_v26 = vadd.f32 %v2487_v23, %v2383_v22  ;;  %v821_v27 = vpop.f32.mrb[19].mxu1  ;;  %v1566_v28 = vpop.f32.mrb[19].mxu0  ;;  %v1802_v34 = vsel %vm247_vm0, %v1754_v19, 0.0 }
 0x157   : > { %v1800_v30 = vsel %vm247_vm0, %v1753_v21, 0.0  ;;  %v2541_v31 = vadd.f32 %v1566_v28, %v821_v27 }
 0x158   : > { %v1801_v32 = vadd.f32 %v1800_v30, %v1799_v25  ;;  %v1701_v33 = vadd.f32 %v1700_v29, %v1699_v24  ;;  %v1756_v35 = vmul.f32 %v2540_v26, %v2540_v26  ;;  %v1704_v45 = vsel %vm247_vm0, %v2540_v26, 0.0 }
 0x159   : > { %v1702_v36 = vsel %vm247_vm0, %v2541_v31, 0.0  ;;  %v1755_v37 = vmul.f32 %v2541_v31, %v2541_v31  ;;  %v2386_v38 = vpop.f32.mrb[20].mxu1  ;;  %v2490_v39 = vpop.f32.mrb[20].mxu0 }
 0x15a   : > { %v1703_v40 = vadd.f32 %v1702_v36, %v1701_v33  ;;  %v1803_v41 = vadd.f32 %v1802_v34, %v1801_v32  ;;  %v2542_v42 = vadd.f32 %v2490_v39, %v2386_v38  ;;  %v831_v43 = vpop.f32.mrb[21].mxu1  ;;  %v1576_v44 = vpop.f32.mrb[21].mxu0  ;;  %v1806_v50 = vsel %vm247_vm0, %v1756_v35, 0.0 }
 0x15b   : > { %v1804_v46 = vsel %vm247_vm0, %v1755_v37, 0.0  ;;  %v2543_v47 = vadd.f32 %v1576_v44, %v831_v43 }
 0x15c   : > { %v1805_v48 = vadd.f32 %v1804_v46, %v1803_v41  ;;  %v1705_v49 = vadd.f32 %v1704_v45, %v1703_v40  ;;  %v1758_v51 = vmul.f32 %v2542_v42, %v2542_v42  ;;  %v1708_v61 = vsel %vm247_vm0, %v2542_v42, 0.0 }
 0x15d   : > { %v1706_v52 = vsel %vm247_vm0, %v2543_v47, 0.0  ;;  %v1757_v53 = vmul.f32 %v2543_v47, %v2543_v47  ;;  %v2389_v54 = vpop.f32.mrb[22].mxu1  ;;  %v2493_v55 = vpop.f32.mrb[22].mxu0 }
 0x15e   : > { %v1707_v56 = vadd.f32 %v1706_v52, %v1705_v49  ;;  %v1807_v57 = vadd.f32 %v1806_v50, %v1805_v48  ;;  %v2544_v58 = vadd.f32 %v2493_v55, %v2389_v54  ;;  %v841_v59 = vpop.f32.mrb[23].mxu1  ;;  %v1586_v60 = vpop.f32.mrb[23].mxu0  ;;  %v1810_v2 = vsel %vm247_vm0, %v1758_v51, 0.0 }
 0x15f   : > { %v1808_v62 = vsel %vm247_vm0, %v1757_v53, 0.0  ;;  %v2545_v63 = vadd.f32 %v1586_v60, %v841_v59 }
 0x160   : > { %v1809_v0 = vadd.f32 %v1808_v62, %v1807_v57  ;;  %v1709_v1 = vadd.f32 %v1708_v61, %v1707_v56  ;;  %v1760_v3 = vmul.f32 %v2544_v58, %v2544_v58  ;;  %v1712_v14 = vsel %vm247_vm0, %v2544_v58, 0.0 }
 0x161   : > { %v1710_v4 = vsel %vm247_vm0, %v2545_v63, 0.0  ;;  %v1759_v5 = vmul.f32 %v2545_v63, %v2545_v63  ;;  %v2392_v6 = vpop.f32.mrb[24].mxu1  ;;  %v2496_v7 = vpop.f32.mrb[24].mxu0 }
 0x162   : > { %v1711_v8 = vadd.f32 %v1710_v4, %v1709_v1  ;;  %v1811_v9 = vadd.f32 %v1810_v2, %v1809_v0  ;;  %v2546_v10 = vadd.f32 %v2496_v7, %v2392_v6  ;;  %v851_v11 = vpop.f32.mrb[25].mxu1  ;;  %v1596_v12 = vpop.f32.mrb[25].mxu0  ;;  %v1814_v18 = vsel %vm247_vm0, %v1760_v3, 0.0 }
 0x163   : > { %v1812_v13 = vsel %vm247_vm0, %v1759_v5, 0.0  ;;  %v2547_v15 = vadd.f32 %v1596_v12, %v851_v11 }
 0x164   : > { %v1813_v16 = vadd.f32 %v1812_v13, %v1811_v9  ;;  %v1713_v17 = vadd.f32 %v1712_v14, %v1711_v8  ;;  %v1762_v19 = vmul.f32 %v2546_v10, %v2546_v10  ;;  %v1716_v29 = vsel %vm247_vm0, %v2546_v10, 0.0 }
 0x165   : > { %v1714_v20 = vsel %vm247_vm0, %v2547_v15, 0.0  ;;  %v1761_v21 = vmul.f32 %v2547_v15, %v2547_v15  ;;  %v2395_v22 = vpop.f32.mrb[26].mxu1  ;;  %v2499_v23 = vpop.f32.mrb[26].mxu0 }
 0x166   : > { %v1715_v24 = vadd.f32 %v1714_v20, %v1713_v17  ;;  %v1815_v25 = vadd.f32 %v1814_v18, %v1813_v16  ;;  %v2548_v26 = vadd.f32 %v2499_v23, %v2395_v22  ;;  %v861_v27 = vpop.f32.mrb[27].mxu1  ;;  %v1606_v28 = vpop.f32.mrb[27].mxu0  ;;  %v1818_v34 = vsel %vm247_vm0, %v1762_v19, 0.0 }
 0x167   : > { %v1816_v30 = vsel %vm247_vm0, %v1761_v21, 0.0  ;;  %v2549_v31 = vadd.f32 %v1606_v28, %v861_v27 }
 0x168   : > { %v1817_v32 = vadd.f32 %v1816_v30, %v1815_v25  ;;  %v1717_v33 = vadd.f32 %v1716_v29, %v1715_v24  ;;  %v1764_v35 = vmul.f32 %v2548_v26, %v2548_v26  ;;  %v1720_v45 = vsel %vm247_vm0, %v2548_v26, 0.0 }
 0x169   : > { %v1718_v36 = vsel %vm247_vm0, %v2549_v31, 0.0  ;;  %v1763_v37 = vmul.f32 %v2549_v31, %v2549_v31  ;;  %v2398_v38 = vpop.f32.mrb[28].mxu1  ;;  %v2502_v39 = vpop.f32.mrb[28].mxu0 }
 0x16a   : > { %v1719_v40 = vadd.f32 %v1718_v36, %v1717_v33  ;;  %v1819_v41 = vadd.f32 %v1818_v34, %v1817_v32  ;;  %v2550_v42 = vadd.f32 %v2502_v39, %v2398_v38  ;;  %v871_v43 = vpop.f32.mrb[29].mxu1  ;;  %v1616_v44 = vpop.f32.mrb[29].mxu0  ;;  %v1822_v50 = vsel %vm247_vm0, %v1764_v35, 0.0 }
 0x16b   : > { %v1820_v46 = vsel %vm247_vm0, %v1763_v37, 0.0  ;;  %v2551_v47 = vadd.f32 %v1616_v44, %v871_v43 }
 0x16c   : > { %v1821_v48 = vadd.f32 %v1820_v46, %v1819_v41  ;;  %v1721_v49 = vadd.f32 %v1720_v45, %v1719_v40  ;;  %v1766_v51 = vmul.f32 %v2550_v42, %v2550_v42  ;;  %v1724_v61 = vsel %vm247_vm0, %v2550_v42, 0.0 }
 0x16d   : > { %v1722_v52 = vsel %vm247_vm0, %v2551_v47, 0.0  ;;  %v1765_v53 = vmul.f32 %v2551_v47, %v2551_v47  ;;  %v2401_v54 = vpop.f32.mrb[30].mxu1  ;;  %v2505_v55 = vpop.f32.mrb[30].mxu0 }
 0x16e   : > { %v1723_v56 = vadd.f32 %v1722_v52, %v1721_v49  ;;  %v1823_v57 = vadd.f32 %v1822_v50, %v1821_v48  ;;  %v2552_v58 = vadd.f32 %v2505_v55, %v2401_v54  ;;  %v881_v59 = vpop.f32.mrb[31].mxu1  ;;  %v1626_v60 = vpop.f32.mrb[31].mxu0  ;;  %v1826_v2 = vsel %vm247_vm0, %v1766_v51, 0.0 }
 0x16f   : > { %v1824_v62 = vsel %vm247_vm0, %v1765_v53, 0.0  ;;  %v2553_v63 = vadd.f32 %v1626_v60, %v881_v59 }
 0x170   : > { %v1825_v0 = vadd.f32 %v1824_v62, %v1823_v57  ;;  %v1725_v1 = vadd.f32 %v1724_v61, %v1723_v56  ;;  %v1768_v3 = vmul.f32 %v2552_v58, %v2552_v58  ;;  %v1728_v8 = vsel %vm247_vm0, %v2552_v58, 0.0 }
 0x171   : > { %v1726_v4 = vsel %vm247_vm0, %v2553_v63, 0.0  ;;  %v1767_v5 = vmul.f32 %v2553_v63, %v2553_v63 }
 0x172   : > { %v1727_v6 = vadd.f32 %v1726_v4, %v1725_v1  ;;  %v1827_v7 = vadd.f32 %v1826_v2, %v1825_v0  ;;  %v1830_v12 = vsel %vm247_vm0, %v1768_v3, 0.0 }
 0x173   : > { %v1828_v9 = vsel %vm247_vm0, %v1767_v5, 0.0 }
 0x174   : > { %v1729_v10 = vadd.f32 %v1728_v8, %v1727_v6  ;;  %v1829_v11 = vadd.f32 %v1828_v9, %v1827_v7 }
 0x176   : > { %v1730_v14 = vrot.slane %v1729_v10, 4  ;;  %v1831_v13 = vadd.f32 %v1830_v12, %v1829_v11 }
 0x178   : > { %v1731_v15 = vadd.f32 %v1730_v14, %v1729_v10  ;;  %v1832_v16 = vrot.slane %v1831_v13, 4 }
 0x17a   : > { %v1732_v17 = vrot.slane %v1731_v15, 2  ;;  %v1833_v18 = vadd.f32 %v1832_v16, %v1831_v13 }
 0x17c   : > { %v1733_v19 = vadd.f32 %v1732_v17, %v1731_v15  ;;  %v1834_v20 = vrot.slane %v1833_v18, 2 }
 0x17e   : > { %v1734_v21 = vrot.slane %v1733_v19, 1  ;;  %v1835_v22 = vadd.f32 %v1834_v20, %v1833_v18 }
 0x180   : > { %v1735_v23 = vadd.f32 %v1734_v21, %v1733_v19  ;;  %v1836_v24 = vrot.slane %v1835_v22, 1 }
 0x182   : > { %1840 = vst.msk [vmem:[%s166_s29] sm:$0x1] %vm1839_vm1, %v1735_v23  ;;  %v1837_v25 = vadd.f32 %v1836_v24, %v1835_v22 }
 0x183   : > { %2676 = shalt.err (!%p2673_p3)
}
 0x184   : > { %s2677_s25 = scalar_lea.hbm %s3371_s8, 16  ;;  %s2681_s29 = scalar_lea.hbm %s3449_s2, 64 }
 0x185   : > { %p2678_p4 = scmp.ne.s32.totalorder %s3371_s8, %s2677_s25  ;;  %p2682_p9 = scmp.lt.u32.totalorder %s3371_s8, %s3449_s2 }
 0x186   : > { %p2683_p10 = scmp.lt.u32.totalorder %s2681_s29, %s2677_s25  ;;  %p2685_p12 = scmp.lt.u32.totalorder %s2677_s25, %s3371_s8 }
 0x187   : > { %p2679_p7 = pnand %p2678_p4, %p2819_p5 }
 0x188   : > { %p2684_p11 = por %p2683_p10, %p2682_p9 }
 0x189   : > { %p2680_p8 = pneg %p2679_p7 }
 0x18a   : > { %p2686_p13 = por %p2685_p12, %p2684_p11 }
 0x18c   : > { %p2687_p0 = pnand %p2686_p13, %p2680_p8 }
 0x18e   : > { %2690 = shalt.err (!%p2687_p0)
}
 0x18f   : > { %2619 = dma.vmem_to_hbm [thread:$0]  (%p2819_p5), %s3373_s30, 16, %s3371_s8, %s1843_s11   ;;  %1841 = vst.msk [vmem:[%s172_s4] sm:$0x1] %vm1839_vm1, %v1837_v25 }
 0x190   : > { %s1847_s16 = scalar_lea.sflag [#allocation5], %s3361_s27  ;;  %s2691_s9 = scalar_lea.vmem %s3381_s5, 16 }
 0x191   : > { %p2692_p1 = scmp.ne.s32.totalorder %s3381_s5, %s2691_s9  ;;  %s2760_s17 = smov [#allocation4]  }
 0x192   : > { %s2695_s19 = sshll.u32 %s2760_s17, 4  ;;  %s2696_s19 = int_to_ptr.vmem [resolvable:$false] %s2695_s19 }
 0x193   : > { %p2693_p2 = pnand %p2692_p1, %p2819_p5  ;;  %s2697_s20 = scalar_lea.vmem %s2696_s19, 32 }
 0x194   : > { %p2698_p4 = scmp.lt.s32.totalorder %s3381_s5, %s2696_s19  ;;  %p2699_p7 = scmp.lt.s32.totalorder %s2697_s20, %s2691_s9 }
 0x195   : > { %p2694_p3 = pneg %p2693_p2 }
 0x196   : > { %p2700_p8 = por %p2699_p7, %p2698_p4 }
 0x198   : > { %p2701_p9 = pnand %p2700_p8, %p2694_p3 }
 0x19a   : > { %2704 = shalt.err (!%p2701_p9)
}
 0x19b   : > { %s2705_s27 = scalar_lea.hbm %s3379_s10, 16  ;;  %s2709_s8 = scalar_lea.hbm %s3450_s3, 64 }
 0x19c   : > { %p2706_p10 = scmp.ne.s32.totalorder %s3379_s10, %s2705_s27  ;;  %p2710_p13 = scmp.lt.u32.totalorder %s3379_s10, %s3450_s3 }
 0x19d   : > { %p2711_p0 = scmp.lt.u32.totalorder %s2709_s8, %s2705_s27  ;;  %p2713_p2 = scmp.lt.u32.totalorder %s2705_s27, %s3379_s10 }
 0x19e   : > { %p2707_p11 = pnand %p2706_p10, %p2819_p5 }
 0x19f   : > { %p2712_p1 = por %p2711_p0, %p2710_p13 }
 0x1a0   : > { %p2708_p12 = pneg %p2707_p11 }
 0x1a1   : > { %p2714_p3 = por %p2713_p2, %p2712_p1 }
 0x1a3   : > { %p2715_p4 = pnand %p2714_p3, %p2708_p12 }
 0x1a5   : > { %2718 = shalt.err (!%p2715_p4)
}
 0x1a6   : > { %2620 = dma.vmem_to_hbm [thread:$0]  (%p2819_p5), %s3381_s5, 16, %s3379_s10, %s1847_s16  }
 0x1a7 PF: > { %p2630_p7 = scmp.ge.s32.totalorder %s2757_s15, 2  ;;  %s1884_s25 = sand.u32 1, %s2745_s12  }
 0x1a8   : > { %s1885_s26 = scalar_lea.sflag [#allocation3], %s1884_s25 }
 0x1a9   : > { %p2624_p8 = pnand %p2630_p7, %p2823_p6 }
 0x1ab   : > { %2736 = dma.done.wait (!%p2624_p8), %s1885_s26, 16  }
 0x1ac   : > { %2738 = vsyncadd (!%p2624_p8), %s1885_s26, 4294967280  ;;  %s1893_s28 = scalar_lea.sflag [#allocation5], %s1884_s25 }
 0x1ad   : > { %2740 = dma.done.wait (!%p2624_p8), %s1893_s28, 16  }
 0x1ae   : > { %2742 = vsyncadd (!%p2624_p8), %s1893_s28, 4294967280  ;;  %p17_p5 = scmp.ge.s32.totalorder %s2806_s18, 6   ;;  %s3453_s12 = smov %s2749_s13 }
 0x1af   : > { %s3454_s13 = smov %s2753_s14  ;;  %s3455_s14 = smov %s2817_s21 }
 0x1b0   : > { %s3456_s15 = smov %s2806_s18  ;;  %19 = sbr.rel (!%p17_p5) target bundleno = 5 (0x5), region = 84 }
 0x1b7   :  { %1897 = vsyncpa [#allocation3], 1 }
 0x1b8   :  { %1899 = vsyncpa [#allocation3 + $0x1], 1 }
 0x1b9   :  { %1900 = vsyncpa [#allocation5], 1 }
 0x1ba   :  { %1902 = vsyncpa [#allocation5 + $0x1], 1 }

</bundles_post_ra>
